<compile_context>
chip_gen: v7x
topology: tpu7x:2x2x1
jax: 0.10.0
libtpu: 0.0.40
codegen_flags: <defaults>
</compile_context>

<pallas_src>
import numpy as np
import jax
import jax.numpy as jnp
from jax.experimental import pallas as pl
from jax.experimental.pallas import tpu as pltpu


def _round_up(x: int, m: int) -> int:
    return (x + m - 1) // m * m


def _bilinear_matrix(out_len: int, in_len: int, pad_to: int) -> np.ndarray:
    """(pad_to, in_len) half-pixel bilinear row-interpolation matrix.

    Rows >= out_len are all zero, so the matmul result already lands in the
    top-left of the padded canvas with exact zeros elsewhere.
    """
    W = np.zeros((pad_to, in_len), np.float32)
    if out_len > 0:
        scale = in_len / out_len
        x = (np.arange(out_len) + 0.5) * scale - 0.5   # half-pixel centers
        x0 = np.floor(x).astype(np.int64)
        frac = (x - x0).astype(np.float32)
        lo = np.clip(x0, 0, in_len - 1)
        hi = np.clip(x0 + 1, 0, in_len - 1)
        rows = np.arange(out_len)
        W[rows, lo] += (1.0 - frac)
        W[rows, hi] += frac
    return W


def _make_kernel(C: int, new_w: int, new_h: int, base_value: float,
                 o1p: int, o0p: int, bgr: bool):
    need_fill = float(base_value) != 0.0

    def kernel(img_ref, wr_ref, wct_ref, out_ref):
        # img_ref: (C, H, W)  wr_ref: (o1p, H)  wct_ref: (W, o0p)
        # out_ref: (C, o1p, o0p)
        wr = wr_ref[...]                      # resident row-interp weights
        wct = wct_ref[...]                    # pre-transposed col-interp weights

        # Row interpolation per channel (static unroll, C == 3), stacked along
        # sublanes so the (dominant) column-interpolation matmul runs once.
        tmp = jnp.concatenate(
            [jnp.dot(wr, img_ref[c], preferred_element_type=jnp.float32)
             for c in range(C)],
            axis=0)                                                  # (C*o1p, W)
        res = jnp.dot(tmp, wct, preferred_element_type=jnp.float32)  # (C*o1p, o0p)

        if need_fill:
            # Only needed when base_value != 0; computed once per call.
            row = jax.lax.broadcasted_iota(jnp.int32, (o1p, o0p), 0)
            col = jax.lax.broadcasted_iota(jnp.int32, (o1p, o0p), 1)
            inside = (row < new_w) & (col < new_h)

        for c in range(C):                    # static unroll, C == 3
            oc = (C - 1 - c) if bgr else c    # BGR flip = static channel reorder
            res_c = res[c * o1p:(c + 1) * o1p]          # sublane-aligned slice
            if need_fill:
                res_c = jnp.where(inside, res_c, jnp.float32(base_value))
            out_ref[oc] = res_c

    return kernel


def resize_as_yolo(img_chw, out_size, swap=(2, 1, 0), base_value=0, bgr=True):
    assert swap == (2, 1, 0), "kernel layout is baked for the default swap=(2,1,0)"
    C, H, W = img_chw.shape
    assert C == 3
    O0, O1 = int(out_size[0]), int(out_size[1])

    # get_size(img) -> (width, height), exactly as in the reference module.
    w, h = W, H
    r = min(O1 / w, O0 / h)
    new_w, new_h = int(w * r), int(h * r)      # = (size * r).astype(int)

    # Lane-dense padded canvas; sliced back to (O1, O0) in the wrapper only
    # if padding was actually added.
    O1p = _round_up(max(O1, 8), 8)
    O0p = _round_up(max(O0, 128), 128)

    # Separable bilinear weights, zero-padded to the canvas size (host-side).
    Wr = jnp.asarray(_bilinear_matrix(new_w, H, O1p))                          # (O1p, H)
    WcT = jnp.asarray(np.ascontiguousarray(_bilinear_matrix(new_h, W, O0p).T)) # (W, O0p)

    kernel = _make_kernel(C, new_w, new_h, float(base_value), O1p, O0p, bgr)

    out_p = pl.pallas_call(
        kernel,
        out_shape=jax.ShapeDtypeStruct((C, O1p, O0p), jnp.float32),
        in_specs=[pl.BlockSpec(memory_space=pltpu.MemorySpace.VMEM)] * 3,
        out_specs=pl.BlockSpec(memory_space=pltpu.MemorySpace.VMEM),
    )(img_chw.astype(jnp.float32), Wr, WcT)

    out = out_p if (O1p == O1 and O0p == O0) else out_p[:, :O1, :O0]

    # mask: np.ones(bool) -> int - 1 -> bool  ==> all False.
    mask = jnp.zeros((O0, O1), dtype=jnp.bool_)
    target = {"resize_factor": r, "mask": mask}
    return out, target


def _jax_reference(img, out_size, base_value, bgr):
    C, H, W = img.shape
    O0, O1 = int(out_size[0]), int(out_size[1])
    r = min(O1 / W, O0 / H)
    new_w, new_h = int(W * r), int(H * r)
    Wr = jnp.asarray(_bilinear_matrix(new_w, H, O1))
    Wc = jnp.asarray(_bilinear_matrix(new_h, W, O0))
    src = img[::-1] if bgr else img
    ref = jnp.einsum("oh,chw,pw->cop", Wr, src, Wc)
    row = np.arange(O1)[:, None]
    col = np.arange(O0)[None, :]
    inside = jnp.asarray((row < new_w) & (col < new_h))
    return jnp.where(inside[None], ref, jnp.float32(base_value))


if __name__ == "__main__":
    key = jax.random.PRNGKey(0)
    H, W = 10, 16
    img = jax.random.uniform(key, (3, H, W), dtype=jnp.float32) * 255.0

    # Case 1: square output, base_value=0 (zero-fill fast path), BGR flip.
    out_size = (32, 32)
    out, target = resize_as_yolo(img, out_size, base_value=0, bgr=True)
    out = jax.block_until_ready(out)
    ref = _jax_reference(img, out_size, 0.0, True)
    assert out.shape == (3, out_size[1], out_size[0])
    assert target["mask"].shape == (out_size[0], out_size[1])
    assert not bool(jnp.any(target["mask"]))
    assert jnp.allclose(out, ref, atol=1e-3, rtol=1e-3)

    # Case 2: non-zero base_value, no BGR flip (exercises the where-fill path).
    out2, _ = resize_as_yolo(img, out_size, base_value=114, bgr=False)
    out2 = jax.block_until_ready(out2)
    ref2 = _jax_reference(img, out_size, 114.0, False)
    assert jnp.allclose(out2, ref2, atol=1e-3, rtol=1e-3)

    # Case 3: non-square output (exercises canvas padding + wrapper slicing).
    out_size3 = (48, 40)   # (O0, O1)
    out3, target3 = resize_as_yolo(img, out_size3, base_value=0, bgr=True)
    out3 = jax.block_until_ready(out3)
    ref3 = _jax_reference(img, out_size3, 0.0, True)
    assert out3.shape == (3, out_size3[1], out_size3[0])
    assert target3["mask"].shape == (out_size3[0], out_size3[1])
    assert jnp.allclose(out3, ref3, atol=1e-3, rtol=1e-3)

    print("KERNEL_OK")
</pallas_src>

<mosaic_0001>
module attributes {stable_mosaic.version = 11 : i64} {
  func.func @kernel(%arg0: memref<3x10x16xf32, #tpu.memory_space<vmem>>, %arg1: memref<32x10xf32, #tpu.memory_space<vmem>>, %arg2: memref<16x128xf32, #tpu.memory_space<vmem>>, %arg3: memref<3x32x128xf32, #tpu.memory_space<vmem>>) attributes {dimension_semantics = [], scalar_prefetch = 0 : i64, scratch_operands = 0 : i64, tpu.core_type = #tpu.core_type<tc>} {
    %c0 = arith.constant 0 : index
    %c0_0 = arith.constant 0 : index
    %0 = vector.load %arg1[%c0, %c0_0] : memref<32x10xf32, #tpu.memory_space<vmem>>, vector<32x10xf32>
    %c0_1 = arith.constant 0 : index
    %c0_2 = arith.constant 0 : index
    %1 = vector.load %arg2[%c0_1, %c0_2] : memref<16x128xf32, #tpu.memory_space<vmem>>, vector<16x128xf32>
    %c0_3 = arith.constant 0 : index
    %c0_4 = arith.constant 0 : index
    %c0_5 = arith.constant 0 : index
    %2 = vector.load %arg0[%c0_3, %c0_4, %c0_5] : memref<3x10x16xf32, #tpu.memory_space<vmem>>, vector<1x10x16xf32>
    %3 = vector.shape_cast %2 : vector<1x10x16xf32> to vector<10x16xf32>
    %cst = arith.constant dense<0.000000e+00> : vector<32x16xf32>
    %4 = tpu.matmul %0, %3, %cst {dimension_numbers = #tpu.dot_dimension_numbers<[1], [0], [0], [1], [0, 0, 1, 1], [], []>} : vector<32x10xf32>, vector<10x16xf32>, vector<32x16xf32> -> vector<32x16xf32>
    %c1 = arith.constant 1 : index
    %c0_6 = arith.constant 0 : index
    %c0_7 = arith.constant 0 : index
    %5 = vector.load %arg0[%c1, %c0_6, %c0_7] : memref<3x10x16xf32, #tpu.memory_space<vmem>>, vector<1x10x16xf32>
    %6 = vector.shape_cast %5 : vector<1x10x16xf32> to vector<10x16xf32>
    %cst_8 = arith.constant dense<0.000000e+00> : vector<32x16xf32>
    %7 = tpu.matmul %0, %6, %cst_8 {dimension_numbers = #tpu.dot_dimension_numbers<[1], [0], [0], [1], [0, 0, 1, 1], [], []>} : vector<32x10xf32>, vector<10x16xf32>, vector<32x16xf32> -> vector<32x16xf32>
    %c2 = arith.constant 2 : index
    %c0_9 = arith.constant 0 : index
    %c0_10 = arith.constant 0 : index
    %8 = vector.load %arg0[%c2, %c0_9, %c0_10] : memref<3x10x16xf32, #tpu.memory_space<vmem>>, vector<1x10x16xf32>
    %9 = vector.shape_cast %8 : vector<1x10x16xf32> to vector<10x16xf32>
    %cst_11 = arith.constant dense<0.000000e+00> : vector<32x16xf32>
    %10 = tpu.matmul %0, %9, %cst_11 {dimension_numbers = #tpu.dot_dimension_numbers<[1], [0], [0], [1], [0, 0, 1, 1], [], []>} : vector<32x10xf32>, vector<10x16xf32>, vector<32x16xf32> -> vector<32x16xf32>
    %11 = tpu.concatenate %4, %7, %10 in 0 : vector<32x16xf32>, vector<32x16xf32>, vector<32x16xf32> -> vector<96x16xf32>
    %cst_12 = arith.constant dense<0.000000e+00> : vector<96x128xf32>
    %12 = tpu.matmul %11, %1, %cst_12 {dimension_numbers = #tpu.dot_dimension_numbers<[1], [0], [0], [1], [0, 0, 1, 1], [], []>} : vector<96x16xf32>, vector<16x128xf32>, vector<96x128xf32> -> vector<96x128xf32>
    %13 = vector.extract_strided_slice %12 {offsets = [0, 0], sizes = [32, 128], strides = [1, 1]} : vector<96x128xf32> to vector<32x128xf32>
    %c2_13 = arith.constant 2 : index
    %c0_14 = arith.constant 0 : index
    %c0_15 = arith.constant 0 : index
    %14 = vector.load %arg3[%c2_13, %c0_14, %c0_15] : memref<3x32x128xf32, #tpu.memory_space<vmem>>, vector<1x32x128xf32>
    %15 = vector.shape_cast %14 : vector<1x32x128xf32> to vector<32x128xf32>
    %16 = vector.shape_cast %13 : vector<32x128xf32> to vector<1x32x128xf32>
    tpu.vector_store %arg3[%c2_13, %c0_14, %c0_15], %16 {strides = array<i32>} : memref<3x32x128xf32, #tpu.memory_space<vmem>>, vector<1x32x128xf32>,
    %17 = vector.extract_strided_slice %12 {offsets = [32, 0], sizes = [32, 128], strides = [1, 1]} : vector<96x128xf32> to vector<32x128xf32>
    %c1_16 = arith.constant 1 : index
    %c0_17 = arith.constant 0 : index
    %c0_18 = arith.constant 0 : index
    %18 = vector.load %arg3[%c1_16, %c0_17, %c0_18] : memref<3x32x128xf32, #tpu.memory_space<vmem>>, vector<1x32x128xf32>
    %19 = vector.shape_cast %18 : vector<1x32x128xf32> to vector<32x128xf32>
    %20 = vector.shape_cast %17 : vector<32x128xf32> to vector<1x32x128xf32>
    tpu.vector_store %arg3[%c1_16, %c0_17, %c0_18], %20 {strides = array<i32>} : memref<3x32x128xf32, #tpu.memory_space<vmem>>, vector<1x32x128xf32>,
    %21 = vector.extract_strided_slice %12 {offsets = [64, 0], sizes = [32, 128], strides = [1, 1]} : vector<96x128xf32> to vector<32x128xf32>
    %c0_19 = arith.constant 0 : index
    %c0_20 = arith.constant 0 : index
    %c0_21 = arith.constant 0 : index
    %22 = vector.load %arg3[%c0_19, %c0_20, %c0_21] : memref<3x32x128xf32, #tpu.memory_space<vmem>>, vector<1x32x128xf32>
    %23 = vector.shape_cast %22 : vector<1x32x128xf32> to vector<32x128xf32>
    %24 = vector.shape_cast %21 : vector<32x128xf32> to vector<1x32x128xf32>
    tpu.vector_store %arg3[%c0_19, %c0_20, %c0_21], %24 {strides = array<i32>} : memref<3x32x128xf32, #tpu.memory_space<vmem>>, vector<1x32x128xf32>,
    return
  }
}

</mosaic_0001>

<bundles_post_ra>
// kernel: tpu_custom_call.1
= control target key start
LH: loop header
LB: loop body
LE: loop exit
PB: predicated region body
PF: predicated region fallthrough
CT: control target
= control target key end

     0   :  { %vm36_vm0 = vcmask 1041408   ;;  %vm664_vm1 = vmmov 1   ;;  %vm23_vm3 = vcmask 80896   ;;  %s776_s0 = inlined_call_operand.vmem [shape: f32[3,10,16], index: 0, kind: input, shape index: {}]   ;;  %s777_s1 = inlined_call_operand.vmem [shape: f32[32,10], index: 1, kind: input, shape index: {}]   ;;  %s778_s2 = inlined_call_operand.vmem [shape: f32[16,128], index: 2, kind: input, shape index: {}]   ;;  %s779_s3 = inlined_call_operand.hbm [shape: f32[3,32,128], index: 3, kind: output, shape index: {}]  }
   0x1   :  { %v21_v0 = vld [vmem:[%s776_s0] sm:$0xff]  ;;  %v22_v1 = vld [vmem:[%s776_s0 + $0x8] sm:$0x3]  ;;  %vm697_vm2 = vmpackc.low %vm36_vm0, %vm664_vm1 }
   0x2   :  { %v15_v2 = vld [vmem:[%s777_s1] sm:$0xff]  ;;  %v614_v3 = vpack.c.bf16 %v22_v1, %v21_v0  ;;  %v504_v5 = vld [vmem:[%s776_s0 + $0x10] sm:$0xff]  ;;  %v505_v6 = vld [vmem:[%s776_s0 + $0x18] sm:$0x3] }
   0x3   :  { %566 = vmatprep.mubr.msk.f32.mxu0 %vm23_vm3, %v15_v2  ;;  %v620_v7 = vpack.c.bf16 %v505_v6, %v504_v5  ;;  %v511_v8 = vld [vmem:[%s776_s0 + $0x20] sm:$0xff]  ;;  %v512_v9 = vld [vmem:[%s776_s0 + $0x28] sm:$0x3] }
   0x4   :  { %616 = vmatprep.subr.msk.bf16.mxu0 %vm697_vm2, %v614_v3  ;;  %v19_v10 = vld [vmem:[%s778_s2] sm:$0xff]  ;;  %v16_v11 = vld [vmem:[%s777_s1 + $0x8] sm:$0xff] }
   0x5   :  { %619 = vmatpush3.bf16.msk.msra.mxu0 %vm697_vm2, %v614_v3  ;;  %v20_v12 = vld [vmem:[%s778_s2 + $0x8] sm:$0xff] }
   0x6   :  { %8 = vsyncpa [#allocation3], 0  ;;  %622 = vmatprep.subr.msk.bf16.mxu0 %vm697_vm2, %v620_v7  ;;  %v17_v13 = vld [vmem:[%s777_s1 + $0x10] sm:$0xff]  ;;  %v626_v14 = vpack.c.bf16 %v512_v9, %v511_v8  ;;  %v632_v15 = vpack.c.bf16 %v20_v12, %v19_v10  ;;  %v18_v16 = vld [vmem:[%s777_s1 + $0x18] sm:$0xff]  ;;  %vm307_vm4 = vcmask 130048   ;;  %s665_s1 = smov [#allocation2]  }
   0x7   :  { %s488_s7 = sshll.u32 %s665_s1, 4  ;;  %s489_s7 = int_to_ptr.vmem [resolvable:$true] %s488_s7 }
   0x8   :  { %567 = vmatmul.mubr.msk.f32.vlgmr.msra.gmra.mrb[0].mxu0 %vm23_vm3, %v16_v11  ;;  %633 = vmatprep.subr.bf16.mxu1 %v632_v15  ;;  %s640_s8 = scalar_lea.vmem %s489_s7, 1536  ;;  %p645_p1 = scmp.lt.s32.totalorder %s489_s7, %s489_s7 }
   0x9   :  { %625 = vmatpush3.bf16.msk.msra.mxu0 %vm697_vm2, %v620_v7  ;;  %569 = vmatprep.mubr.msk.f32.mxu0 %vm23_vm3, %v17_v13  ;;  %p641_p0 = scmp.ne.s32.totalorder %s489_s7, %s640_s8  ;;  %p646_p2 = scmp.lt.s32.totalorder %s640_s8, %s640_s8 }
   0xa   :  { %628 = vmatprep.subr.msk.bf16.mxu0 %vm697_vm2, %v626_v14  ;;  %635 = vmatpush3.bf16.msra.mxu1 %v632_v15 }
   0xb   :  { %p647_p3 = por %p646_p2, %p645_p1 }
   0xc   :  { %570 = vmatmul.mubr.msk.f32.gmra.mrb[2].mxu0 %vm23_vm3, %v18_v16 }
   0xd   :  { %576 = vmatprep.mubr.msk.f32.mxu0 %vm23_vm3, %v15_v2  ;;  %p648_p4 = pnand %p647_p3, %p641_p0 }
  0x10   :  { %577 = vmatmul.mubr.msk.f32.vlgmr.msra.gmra.mrb[4].mxu0 %vm23_vm3, %v16_v11 }
  0x11   :  { %631 = vmatpush3.bf16.msk.msra.mxu0 %vm697_vm2, %v626_v14  ;;  %579 = vmatprep.mubr.msk.f32.mxu0 %vm23_vm3, %v17_v13 }
  0x14   :  { %580 = vmatmul.mubr.msk.f32.gmra.mrb[6].mxu0 %vm23_vm3, %v18_v16 }
  0x15   :  { %586 = vmatprep.mubr.msk.f32.mxu0 %vm23_vm3, %v15_v2 }
  0x18   :  { %587 = vmatmul.mubr.msk.f32.vlgmr.msra.gmra.mrb[8].mxu0 %vm23_vm3, %v16_v11 }
  0x19   :  { %589 = vmatprep.mubr.msk.f32.mxu0 %vm23_vm3, %v17_v13 }
  0x1c   :  { %590 = vmatmul.mubr.msk.f32.gmra.mrb[10].mxu0 %vm23_vm3, %v18_v16 }
  0xdb   :  { %v568_v17 = vpop.f32.mrb[0].mxu0 }
  0xdc   :  { %v106_v18 = vpop.f32.mrb[1].mxu0 }
  0xdd   :  { %596 = vmatprep.mubr.msk.f32.mxu1 %vm307_vm4, %v106_v18 }
  0xde   :  { %597 = vmatmul.mubr.msk.f32.vlgmr.msra.gmra.mrb[0].mxu1 %vm307_vm4, %v568_v17 }
  0xdf   :  { %v571_v19 = vpop.f32.mrb[2].mxu0 }
  0xe0   :  { %v116_v20 = vpop.f32.mrb[3].mxu0 }
  0xe1   :  { %599 = vmatprep.mubr.msk.f32.mxu1 %vm307_vm4, %v116_v20 }
  0xe2   :  { %600 = vmatmul.mubr.msk.f32.gmra.mrb[2].mxu1 %vm307_vm4, %v571_v19 }
  0xe3   :  { %v578_v21 = vpop.f32.mrb[4].mxu0 }
  0xe4   :  { %v197_v22 = vpop.f32.mrb[5].mxu0 }
  0xe5   :  { %602 = vmatprep.mubr.msk.f32.mxu1 %vm307_vm4, %v197_v22 }
  0xe6   :  { %603 = vmatmul.mubr.msk.f32.gmra.mrb[4].mxu1 %vm307_vm4, %v578_v21 }
  0xe7   :  { %v581_v23 = vpop.f32.mrb[6].mxu0 }
  0xe8   :  { %v207_v24 = vpop.f32.mrb[7].mxu0 }
  0xe9   :  { %605 = vmatprep.mubr.msk.f32.mxu1 %vm307_vm4, %v207_v24 }
  0xea   :  { %606 = vmatmul.mubr.msk.f32.gmra.mrb[6].mxu1 %vm307_vm4, %v581_v23 }
  0xeb   :  { %v588_v25 = vpop.f32.mrb[8].mxu0 }
  0xec   :  { %v288_v26 = vpop.f32.mrb[9].mxu0 }
  0xed   :  { %608 = vmatprep.mubr.msk.f32.mxu1 %vm307_vm4, %v288_v26 }
  0xee   :  { %609 = vmatmul.mubr.msk.f32.gmra.mrb[8].mxu1 %vm307_vm4, %v588_v25 }
  0xef   :  { %v591_v27 = vpop.f32.mrb[10].mxu0 }
  0xf0   :  { %v298_v28 = vpop.f32.mrb[11].mxu0 }
  0xf1   :  { %611 = vmatprep.mubr.msk.f32.mxu1 %vm307_vm4, %v298_v28 }
  0xf2   :  { %612 = vmatmul.mubr.msk.f32.gmra.mrb[10].mxu1 %vm307_vm4, %v591_v27 }
 0x1b1   :  { %v598_v29 = vpop.f32.mrb[0].mxu1 }
 0x1b2   :  { %471 = vst [vmem:[#allocation2 + $0x48] sm:$0xff] %v598_v29  ;;  %v410_v30 = vpop.f32.mrb[1].mxu1 }
 0x1b3   :  { %470 = vst [vmem:[#allocation2 + $0x40] sm:$0xff] %v410_v30 }
 0x1b5   :  { %v601_v31 = vpop.f32.mrb[2].mxu1 }
 0x1b6   :  { %473 = vst [vmem:[#allocation2 + $0x58] sm:$0xff] %v601_v31  ;;  %v420_v32 = vpop.f32.mrb[3].mxu1 }
 0x1b7   :  { %472 = vst [vmem:[#allocation2 + $0x50] sm:$0xff] %v420_v32 }
 0x1b9   :  { %v604_v33 = vpop.f32.mrb[4].mxu1 }
 0x1ba   :  { %476 = vst [vmem:[#allocation2 + $0x28] sm:$0xff] %v604_v33  ;;  %v430_v34 = vpop.f32.mrb[5].mxu1 }
 0x1bb   :  { %475 = vst [vmem:[#allocation2 + $0x20] sm:$0xff] %v430_v34 }
 0x1bd   :  { %v607_v35 = vpop.f32.mrb[6].mxu1 }
 0x1be   :  { %478 = vst [vmem:[#allocation2 + $0x38] sm:$0xff] %v607_v35  ;;  %v440_v36 = vpop.f32.mrb[7].mxu1 }
 0x1bf   :  { %477 = vst [vmem:[#allocation2 + $0x30] sm:$0xff] %v440_v36 }
 0x1c1   :  { %v610_v37 = vpop.f32.mrb[8].mxu1 }
 0x1c2   :  { %480 = vst [vmem:[#allocation2 + $0x8] sm:$0xff] %v610_v37  ;;  %v450_v38 = vpop.f32.mrb[9].mxu1 }
 0x1c3   :  { %479 = vst [vmem:[#allocation2] sm:$0xff] %v450_v38 }
 0x1c5   :  { %v613_v39 = vpop.f32.mrb[10].mxu1 }
 0x1c6   :  { %482 = vst [vmem:[#allocation2 + $0x18] sm:$0xff] %v613_v39  ;;  %v460_v40 = vpop.f32.mrb[11].mxu1 }
 0x1c7   :  { %481 = vst [vmem:[#allocation2 + $0x10] sm:$0xff] %v460_v40 }
 0x1c8   :  { %651 = shalt.err (!%p648_p4)
}
 0x1c9   :  { %s652_s11 = scalar_lea.hbm %s779_s3, 1536 }
 0x1ca   :  { %p653_p5 = scmp.ne.s32.totalorder %s779_s3, %s652_s11  ;;  %p656_p6 = scmp.lt.u32.totalorder %s652_s11, %s779_s3 }
 0x1cc   :  { %p658_p7 = pnand %p656_p6, %p653_p5 }
 0x1ce   :  { %661 = shalt.err (!%p658_p7)
}
 0x1cf   :  { %s666_s16 = smov 128   ;;  %s667_s17 = smov 8  }
 0x1d0   :  { %494 = dma.vmem_to_hbm [thread:$0]  %s489_s7, 1536, %s779_s3, [#allocation3], %s666_s16, %s666_s16, %s667_s17  }
 0x1d1   :  { %662 = dma.done.wait [#allocation3], 1536  }
 0x1d2   :  { %663 = vsyncadd [#allocation3], 4294965760 }
 0x1d3   :  { %498 = vsyncpa [#allocation3], 1 }

</bundles_post_ra>
